<compile_context>
chip_gen: v7x
topology: tpu7x:2x2x1
jax: 0.10.0
libtpu: 0.0.40
codegen_flags: <defaults>
</compile_context>

<pallas_src>
import functools

import jax
import jax.numpy as jnp
from jax.experimental import pallas as pl
from jax.experimental.pallas import tpu as pltpu


def _gtconv_kernel(w1_ref, w2_ref, a_ref, a1_ref, a2_ref, *, in_channels, out_channels):
    """Pass 1: GTConv weighted sums for one (row-tile, col-tile) of A.

    w1_ref, w2_ref : SMEM (out_channels, in_channels) softmaxed filters
    a_ref          : VMEM (in_channels, T, T) f32 adjacency block
    a1_ref, a2_ref : VMEM (out_channels, T, T) bf16 outputs (conv1 / conv2)
    """
    for c in range(out_channels):
        # Register accumulation: one fused expression, no scratch round-trips.
        s1 = w1_ref[c, 0] * a_ref[0]
        s2 = w2_ref[c, 0] * a_ref[0]
        for j in range(1, in_channels):
            aj = a_ref[j]
            s1 = s1 + w1_ref[c, j] * aj
            s2 = s2 + w2_ref[c, j] * aj
        a1_ref[c] = s1.astype(a1_ref.dtype)
        a2_ref[c] = s2.astype(a2_ref.dtype)


def _bmm_kernel(a1_ref, a2_ref, h_ref):
    """Pass 2: one (c, i, j, k) tile of H[c] = A1[c] @ A2[c].

    a1_ref : VMEM (1, TM, TK) bf16
    a2_ref : VMEM (1, TK, TN) bf16
    h_ref  : VMEM (1, TM, TN) f32 — resident across k (index map is k-invariant),
             accumulated into directly (no scratch accumulator, no epilogue copy).
    """
    k = pl.program_id(3)
    prod = jnp.dot(a1_ref[0], a2_ref[0], preferred_element_type=jnp.float32)

    @pl.when(k == 0)
    def _():
        h_ref[0] = prod

    @pl.when(k != 0)
    def _():
        h_ref[0] = h_ref[0] + prod


def _round_up(x, m):
    return ((x + m - 1) // m) * m


def _pick_tile(n_padded, per_tile_bytes, budget_bytes):
    # Prefer 512 (roofline: higher arithmetic intensity / better HBM streaming),
    # fall back to 256, then 128 (n_padded is always a multiple of 128).
    for t in (512, 256):
        if n_padded % t == 0 and per_tile_bytes(t) <= budget_bytes:
            return t
    return 128


def gt_layer_forward(A, W1, W2):
    """GTLayer(first=True).forward on a dense adjacency stack A.

    A  : (in_channels, N, N) adjacency matrices (dense equivalent of the COO inputs)
    W1 : (out_channels, in_channels) conv1 weight
    W2 : (out_channels, in_channels) conv2 weight
    Returns (H, [filter1, filter2]) with H of shape (out_channels, N, N) float32.
    """
    in_channels, N, _ = A.shape
    out_channels = W1.shape[0]

    # Parameter transform (tiny) stays in plain JAX.
    f1 = jax.nn.softmax(W1.astype(jnp.float32), axis=1)
    f2 = jax.nn.softmax(W2.astype(jnp.float32), axis=1)

    # Pad N up to a multiple of 128 with zeros (zero rows/cols contribute nothing).
    A_f32 = A.astype(jnp.float32)
    Np = max(128, _round_up(N, 128))
    if Np != N:
        A_f32 = jnp.pad(A_f32, ((0, 0), (0, Np - N), (0, Np - N)))

    vmem_budget = 24 * 1024 * 1024  # keep comfortably under the 32 MiB scoped limit

    # ---------------- Pass 1: GTConv weighted sums (mem-bound streaming) ----------------
    # VMEM estimate: double-buffered f32 input block + 2 double-buffered bf16 outputs.
    t1 = _pick_tile(
        Np,
        lambda t: 2 * in_channels * t * t * 4 + 4 * out_channels * t * t * 2,
        vmem_budget,
    )
    conv_kernel = functools.partial(
        _gtconv_kernel, in_channels=in_channels, out_channels=out_channels)
    conv_flops = 4 * out_channels * in_channels * Np * Np
    conv_bytes = (in_channels * Np * Np * 4            # A read once (f32)
                  + 2 * out_channels * Np * Np * 2     # A1, A2 written (bf16)
                  + 2 * out_channels * in_channels * 4)

    A1, A2 = pl.pallas_call(
        conv_kernel,
        out_shape=(jax.ShapeDtypeStruct((out_channels, Np, Np), jnp.bfloat16),
                   jax.ShapeDtypeStruct((out_channels, Np, Np), jnp.bfloat16)),
        grid_spec=pltpu.PrefetchScalarGridSpec(
            num_scalar_prefetch=0,
            grid=(Np // t1, Np // t1),
            in_specs=[
                pl.BlockSpec(memory_space=pltpu.MemorySpace.SMEM),   # filter1
                pl.BlockSpec(memory_space=pltpu.MemorySpace.SMEM),   # filter2
                pl.BlockSpec((in_channels, t1, t1), lambda i, j: (0, i, j)),
            ],
            out_specs=[
                pl.BlockSpec((out_channels, t1, t1), lambda i, j: (0, i, j)),
                pl.BlockSpec((out_channels, t1, t1), lambda i, j: (0, i, j)),
            ],
        ),
        compiler_params=pltpu.CompilerParams(
            dimension_semantics=("parallel", "parallel"),
            vmem_limit_bytes=32 * 1024 * 1024,
        ),
        cost_estimate=pl.CostEstimate(
            flops=int(conv_flops), transcendentals=0, bytes_accessed=int(conv_bytes)),
    )(f1, f2, A_f32)

    # ---------------- Pass 2: batched tiled matmul H[c] = A1[c] @ A2[c] ----------------
    # VMEM estimate: 2 double-buffered bf16 operand blocks + double-buffered f32 output.
    t2 = _pick_tile(Np, lambda t: 4 * t * t * 2 + 2 * t * t * 4, vmem_budget)
    mm_flops = out_channels * 2 * Np ** 3
    mm_bytes = out_channels * (2 * (Np // t2) * Np * Np * 2   # A1 per j-tile, A2 per i-tile
                               + Np * Np * 4)                 # H written once

    H = pl.pallas_call(
        _bmm_kernel,
        out_shape=jax.ShapeDtypeStruct((out_channels, Np, Np), jnp.float32),
        grid_spec=pltpu.PrefetchScalarGridSpec(
            num_scalar_prefetch=0,
            grid=(out_channels, Np // t2, Np // t2, Np // t2),
            in_specs=[
                pl.BlockSpec((1, t2, t2), lambda c, i, j, k: (c, i, k)),
                pl.BlockSpec((1, t2, t2), lambda c, i, j, k: (c, k, j)),
            ],
            out_specs=pl.BlockSpec((1, t2, t2), lambda c, i, j, k: (c, i, j)),
        ),
        compiler_params=pltpu.CompilerParams(
            dimension_semantics=("parallel", "parallel", "parallel", "arbitrary"),
            vmem_limit_bytes=32 * 1024 * 1024,
        ),
        cost_estimate=pl.CostEstimate(
            flops=int(mm_flops), transcendentals=0, bytes_accessed=int(mm_bytes)),
    )(A1, A2)

    if Np != N:
        H = H[:, :N, :N]
    return H, [f1, f2]


if __name__ == "__main__":
    # Small shapes consistent with the module: num edge types (in_channels)=4,
    # output channels=2, num_nodes=128.
    in_channels, out_channels, num_nodes = 4, 2, 128

    key = jax.random.PRNGKey(0)
    k_w1, k_w2, k_adj, k_val = jax.random.split(key, 4)

    # nn.init.normal_(weight, std=0.01)
    W1 = 0.01 * jax.random.normal(k_w1, (out_channels, in_channels), jnp.float32)
    W2 = 0.01 * jax.random.normal(k_w2, (out_channels, in_channels), jnp.float32)

    # Sparse-ish binary adjacency matrices, one per edge type / metapath.
    A = (jax.random.uniform(k_adj, (in_channels, num_nodes, num_nodes)) < 0.1
         ).astype(jnp.float32)

    H, W = gt_layer_forward(A, W1, W2)
    H = jax.block_until_ready(H)

    # Pure-JAX f32 reference.
    f1, f2 = W
    A1_ref = jnp.einsum("ci,inm->cnm", f1, A)
    A2_ref = jnp.einsum("ci,inm->cnm", f2, A)
    H_ref = jnp.einsum("cnk,ckm->cnm", A1_ref, A2_ref)

    assert H.shape == (out_channels, num_nodes, num_nodes)
    # bf16 MXU operands (f32 accumulation) -> loosened tolerance vs the f32 reference.
    assert jnp.allclose(H, H_ref, rtol=2e-2, atol=1e-4), float(jnp.max(jnp.abs(H - H_ref)))

    # Second case: non-128-divisible N with non-binary adjacency (exercises the padding
    # path and the single-rounding bf16 operand handling).
    n2 = 200
    A_nb = ((jax.random.uniform(k_adj, (in_channels, n2, n2)) < 0.1).astype(jnp.float32)
            * jax.random.uniform(k_val, (in_channels, n2, n2)))
    H2, W2_out = gt_layer_forward(A_nb, W1, W2)
    H2 = jax.block_until_ready(H2)
    g1, g2 = W2_out
    H2_ref = jnp.einsum("cnk,ckm->cnm",
                        jnp.einsum("ci,inm->cnm", g1, A_nb),
                        jnp.einsum("ci,inm->cnm", g2, A_nb))
    assert H2.shape == (out_channels, n2, n2)
    assert jnp.allclose(H2, H2_ref, rtol=2e-2, atol=1e-4), float(jnp.max(jnp.abs(H2 - H2_ref)))

    print("KERNEL_OK")
</pallas_src>

<mosaic_0001>
module attributes {stable_mosaic.version = 11 : i64} {
  func.func @_gtconv_kernel(%arg0: i32, %arg1: i32, %arg2: memref<2x4xf32, #tpu.memory_space<smem>>, %arg3: memref<2x4xf32, #tpu.memory_space<smem>>, %arg4: memref<4x128x128xf32, #tpu.memory_space<vmem>>, %arg5: memref<2x128x128xbf16, #tpu.memory_space<vmem>>, %arg6: memref<2x128x128xbf16, #tpu.memory_space<vmem>>) attributes {dimension_semantics = [#tpu.dimension_semantics<parallel>, #tpu.dimension_semantics<parallel>], iteration_bounds = array<i64: 1, 1>, scalar_prefetch = 0 : i64, scratch_operands = 0 : i64, tpu.core_type = #tpu.core_type<tc>, window_params = [{transform_indices = @transform_0, window_bounds = array<i64: 2, 4>}, {transform_indices = @transform_1, window_bounds = array<i64: 2, 4>}, {transform_indices = @transform_2, window_bounds = array<i64: 4, 128, 128>}, {transform_indices = @transform_3, window_bounds = array<i64: 2, 128, 128>}, {transform_indices = @transform_4, window_bounds = array<i64: 2, 128, 128>}]} {
    %c0 = arith.constant 0 : index
    %c0_0 = arith.constant 0 : index
    %0 = memref.load %arg2[%c0, %c0_0] : memref<2x4xf32, #tpu.memory_space<smem>>
    %c0_1 = arith.constant 0 : index
    %c0_2 = arith.constant 0 : index
    %c0_3 = arith.constant 0 : index
    %1 = vector.load %arg4[%c0_1, %c0_2, %c0_3] : memref<4x128x128xf32, #tpu.memory_space<vmem>>, vector<1x128x128xf32>
    %2 = vector.shape_cast %1 : vector<1x128x128xf32> to vector<128x128xf32>
    %3 = vector.broadcast %0 : f32 to vector<128x128xf32>
    %4 = arith.mulf %3, %2 : vector<128x128xf32>
    %c0_4 = arith.constant 0 : index
    %c0_5 = arith.constant 0 : index
    %5 = memref.load %arg3[%c0_4, %c0_5] : memref<2x4xf32, #tpu.memory_space<smem>>
    %c0_6 = arith.constant 0 : index
    %c0_7 = arith.constant 0 : index
    %c0_8 = arith.constant 0 : index
    %6 = vector.load %arg4[%c0_6, %c0_7, %c0_8] : memref<4x128x128xf32, #tpu.memory_space<vmem>>, vector<1x128x128xf32>
    %7 = vector.shape_cast %6 : vector<1x128x128xf32> to vector<128x128xf32>
    %8 = vector.broadcast %5 : f32 to vector<128x128xf32>
    %9 = arith.mulf %8, %7 : vector<128x128xf32>
    %c1 = arith.constant 1 : index
    %c0_9 = arith.constant 0 : index
    %c0_10 = arith.constant 0 : index
    %10 = vector.load %arg4[%c1, %c0_9, %c0_10] : memref<4x128x128xf32, #tpu.memory_space<vmem>>, vector<1x128x128xf32>
    %11 = vector.shape_cast %10 : vector<1x128x128xf32> to vector<128x128xf32>
    %c0_11 = arith.constant 0 : index
    %c1_12 = arith.constant 1 : index
    %12 = memref.load %arg2[%c0_11, %c1_12] : memref<2x4xf32, #tpu.memory_space<smem>>
    %13 = vector.broadcast %12 : f32 to vector<128x128xf32>
    %14 = arith.mulf %13, %11 : vector<128x128xf32>
    %15 = arith.addf %4, %14 : vector<128x128xf32>
    %c0_13 = arith.constant 0 : index
    %c1_14 = arith.constant 1 : index
    %16 = memref.load %arg3[%c0_13, %c1_14] : memref<2x4xf32, #tpu.memory_space<smem>>
    %17 = vector.broadcast %16 : f32 to vector<128x128xf32>
    %18 = arith.mulf %17, %11 : vector<128x128xf32>
    %19 = arith.addf %9, %18 : vector<128x128xf32>
    %c2 = arith.constant 2 : index
    %c0_15 = arith.constant 0 : index
    %c0_16 = arith.constant 0 : index
    %20 = vector.load %arg4[%c2, %c0_15, %c0_16] : memref<4x128x128xf32, #tpu.memory_space<vmem>>, vector<1x128x128xf32>
    %21 = vector.shape_cast %20 : vector<1x128x128xf32> to vector<128x128xf32>
    %c0_17 = arith.constant 0 : index
    %c2_18 = arith.constant 2 : index
    %22 = memref.load %arg2[%c0_17, %c2_18] : memref<2x4xf32, #tpu.memory_space<smem>>
    %23 = vector.broadcast %22 : f32 to vector<128x128xf32>
    %24 = arith.mulf %23, %21 : vector<128x128xf32>
    %25 = arith.addf %15, %24 : vector<128x128xf32>
    %c0_19 = arith.constant 0 : index
    %c2_20 = arith.constant 2 : index
    %26 = memref.load %arg3[%c0_19, %c2_20] : memref<2x4xf32, #tpu.memory_space<smem>>
    %27 = vector.broadcast %26 : f32 to vector<128x128xf32>
    %28 = arith.mulf %27, %21 : vector<128x128xf32>
    %29 = arith.addf %19, %28 : vector<128x128xf32>
    %c3 = arith.constant 3 : index
    %c0_21 = arith.constant 0 : index
    %c0_22 = arith.constant 0 : index
    %30 = vector.load %arg4[%c3, %c0_21, %c0_22] : memref<4x128x128xf32, #tpu.memory_space<vmem>>, vector<1x128x128xf32>
    %31 = vector.shape_cast %30 : vector<1x128x128xf32> to vector<128x128xf32>
    %c0_23 = arith.constant 0 : index
    %c3_24 = arith.constant 3 : index
    %32 = memref.load %arg2[%c0_23, %c3_24] : memref<2x4xf32, #tpu.memory_space<smem>>
    %33 = vector.broadcast %32 : f32 to vector<128x128xf32>
    %34 = arith.mulf %33, %31 : vector<128x128xf32>
    %35 = arith.addf %25, %34 : vector<128x128xf32>
    %c0_25 = arith.constant 0 : index
    %c3_26 = arith.constant 3 : index
    %36 = memref.load %arg3[%c0_25, %c3_26] : memref<2x4xf32, #tpu.memory_space<smem>>
    %37 = vector.broadcast %36 : f32 to vector<128x128xf32>
    %38 = arith.mulf %37, %31 : vector<128x128xf32>
    %39 = arith.addf %29, %38 : vector<128x128xf32>
    %40 = arith.truncf %35 : vector<128x128xf32> to vector<128x128xbf16>
    %c0_27 = arith.constant 0 : index
    %c0_28 = arith.constant 0 : index
    %c0_29 = arith.constant 0 : index
    %41 = vector.load %arg5[%c0_27, %c0_28, %c0_29] : memref<2x128x128xbf16, #tpu.memory_space<vmem>>, vector<1x128x128xbf16>
    %42 = vector.shape_cast %41 : vector<1x128x128xbf16> to vector<128x128xbf16>
    %43 = vector.shape_cast %40 : vector<128x128xbf16> to vector<1x128x128xbf16>
    tpu.vector_store %arg5[%c0_27, %c0_28, %c0_29], %43 {strides = array<i32>} : memref<2x128x128xbf16, #tpu.memory_space<vmem>>, vector<1x128x128xbf16>,
    %44 = arith.truncf %39 : vector<128x128xf32> to vector<128x128xbf16>
    %c0_30 = arith.constant 0 : index
    %c0_31 = arith.constant 0 : index
    %c0_32 = arith.constant 0 : index
    %45 = vector.load %arg6[%c0_30, %c0_31, %c0_32] : memref<2x128x128xbf16, #tpu.memory_space<vmem>>, vector<1x128x128xbf16>
    %46 = vector.shape_cast %45 : vector<1x128x128xbf16> to vector<128x128xbf16>
    %47 = vector.shape_cast %44 : vector<128x128xbf16> to vector<1x128x128xbf16>
    tpu.vector_store %arg6[%c0_30, %c0_31, %c0_32], %47 {strides = array<i32>} : memref<2x128x128xbf16, #tpu.memory_space<vmem>>, vector<1x128x128xbf16>,
    %c1_33 = arith.constant 1 : index
    %c0_34 = arith.constant 0 : index
    %48 = memref.load %arg2[%c1_33, %c0_34] : memref<2x4xf32, #tpu.memory_space<smem>>
    %c0_35 = arith.constant 0 : index
    %c0_36 = arith.constant 0 : index
    %c0_37 = arith.constant 0 : index
    %49 = vector.load %arg4[%c0_35, %c0_36, %c0_37] : memref<4x128x128xf32, #tpu.memory_space<vmem>>, vector<1x128x128xf32>
    %50 = vector.shape_cast %49 : vector<1x128x128xf32> to vector<128x128xf32>
    %51 = vector.broadcast %48 : f32 to vector<128x128xf32>
    %52 = arith.mulf %51, %50 : vector<128x128xf32>
    %c1_38 = arith.constant 1 : index
    %c0_39 = arith.constant 0 : index
    %53 = memref.load %arg3[%c1_38, %c0_39] : memref<2x4xf32, #tpu.memory_space<smem>>
    %c0_40 = arith.constant 0 : index
    %c0_41 = arith.constant 0 : index
    %c0_42 = arith.constant 0 : index
    %54 = vector.load %arg4[%c0_40, %c0_41, %c0_42] : memref<4x128x128xf32, #tpu.memory_space<vmem>>, vector<1x128x128xf32>
    %55 = vector.shape_cast %54 : vector<1x128x128xf32> to vector<128x128xf32>
    %56 = vector.broadcast %53 : f32 to vector<128x128xf32>
    %57 = arith.mulf %56, %55 : vector<128x128xf32>
    %c1_43 = arith.constant 1 : index
    %c0_44 = arith.constant 0 : index
    %c0_45 = arith.constant 0 : index
    %58 = vector.load %arg4[%c1_43, %c0_44, %c0_45] : memref<4x128x128xf32, #tpu.memory_space<vmem>>, vector<1x128x128xf32>
    %59 = vector.shape_cast %58 : vector<1x128x128xf32> to vector<128x128xf32>
    %c1_46 = arith.constant 1 : index
    %c1_47 = arith.constant 1 : index
    %60 = memref.load %arg2[%c1_46, %c1_47] : memref<2x4xf32, #tpu.memory_space<smem>>
    %61 = vector.broadcast %60 : f32 to vector<128x128xf32>
    %62 = arith.mulf %61, %59 : vector<128x128xf32>
    %63 = arith.addf %52, %62 : vector<128x128xf32>
    %c1_48 = arith.constant 1 : index
    %c1_49 = arith.constant 1 : index
    %64 = memref.load %arg3[%c1_48, %c1_49] : memref<2x4xf32, #tpu.memory_space<smem>>
    %65 = vector.broadcast %64 : f32 to vector<128x128xf32>
    %66 = arith.mulf %65, %59 : vector<128x128xf32>
    %67 = arith.addf %57, %66 : vector<128x128xf32>
    %c2_50 = arith.constant 2 : index
    %c0_51 = arith.constant 0 : index
    %c0_52 = arith.constant 0 : index
    %68 = vector.load %arg4[%c2_50, %c0_51, %c0_52] : memref<4x128x128xf32, #tpu.memory_space<vmem>>, vector<1x128x128xf32>
    %69 = vector.shape_cast %68 : vector<1x128x128xf32> to vector<128x128xf32>
    %c1_53 = arith.constant 1 : index
    %c2_54 = arith.constant 2 : index
    %70 = memref.load %arg2[%c1_53, %c2_54] : memref<2x4xf32, #tpu.memory_space<smem>>
    %71 = vector.broadcast %70 : f32 to vector<128x128xf32>
    %72 = arith.mulf %71, %69 : vector<128x128xf32>
    %73 = arith.addf %63, %72 : vector<128x128xf32>
    %c1_55 = arith.constant 1 : index
    %c2_56 = arith.constant 2 : index
    %74 = memref.load %arg3[%c1_55, %c2_56] : memref<2x4xf32, #tpu.memory_space<smem>>
    %75 = vector.broadcast %74 : f32 to vector<128x128xf32>
    %76 = arith.mulf %75, %69 : vector<128x128xf32>
    %77 = arith.addf %67, %76 : vector<128x128xf32>
    %c3_57 = arith.constant 3 : index
    %c0_58 = arith.constant 0 : index
    %c0_59 = arith.constant 0 : index
    %78 = vector.load %arg4[%c3_57, %c0_58, %c0_59] : memref<4x128x128xf32, #tpu.memory_space<vmem>>, vector<1x128x128xf32>
    %79 = vector.shape_cast %78 : vector<1x128x128xf32> to vector<128x128xf32>
    %c1_60 = arith.constant 1 : index
    %c3_61 = arith.constant 3 : index
    %80 = memref.load %arg2[%c1_60, %c3_61] : memref<2x4xf32, #tpu.memory_space<smem>>
    %81 = vector.broadcast %80 : f32 to vector<128x128xf32>
    %82 = arith.mulf %81, %79 : vector<128x128xf32>
    %83 = arith.addf %73, %82 : vector<128x128xf32>
    %c1_62 = arith.constant 1 : index
    %c3_63 = arith.constant 3 : index
    %84 = memref.load %arg3[%c1_62, %c3_63] : memref<2x4xf32, #tpu.memory_space<smem>>
    %85 = vector.broadcast %84 : f32 to vector<128x128xf32>
    %86 = arith.mulf %85, %79 : vector<128x128xf32>
    %87 = arith.addf %77, %86 : vector<128x128xf32>
    %88 = arith.truncf %83 : vector<128x128xf32> to vector<128x128xbf16>
    %c1_64 = arith.constant 1 : index
    %c0_65 = arith.constant 0 : index
    %c0_66 = arith.constant 0 : index
    %89 = vector.load %arg5[%c1_64, %c0_65, %c0_66] : memref<2x128x128xbf16, #tpu.memory_space<vmem>>, vector<1x128x128xbf16>
    %90 = vector.shape_cast %89 : vector<1x128x128xbf16> to vector<128x128xbf16>
    %91 = vector.shape_cast %88 : vector<128x128xbf16> to vector<1x128x128xbf16>
    tpu.vector_store %arg5[%c1_64, %c0_65, %c0_66], %91 {strides = array<i32>} : memref<2x128x128xbf16, #tpu.memory_space<vmem>>, vector<1x128x128xbf16>,
    %92 = arith.truncf %87 : vector<128x128xf32> to vector<128x128xbf16>
    %c1_67 = arith.constant 1 : index
    %c0_68 = arith.constant 0 : index
    %c0_69 = arith.constant 0 : index
    %93 = vector.load %arg6[%c1_67, %c0_68, %c0_69] : memref<2x128x128xbf16, #tpu.memory_space<vmem>>, vector<1x128x128xbf16>
    %94 = vector.shape_cast %93 : vector<1x128x128xbf16> to vector<128x128xbf16>
    %95 = vector.shape_cast %92 : vector<128x128xbf16> to vector<1x128x128xbf16>
    tpu.vector_store %arg6[%c1_67, %c0_68, %c0_69], %95 {strides = array<i32>} : memref<2x128x128xbf16, #tpu.memory_space<vmem>>, vector<1x128x128xbf16>,
    return
  }
  func.func @transform_0(%arg0: i32, %arg1: i32) -> (i32, i32) {
    %c0_i32 = arith.constant 0 : i32
    %c0_i32_0 = arith.constant 0 : i32
    %c0_i32_1 = arith.constant 0 : i32
    return %c0_i32, %c0_i32_0 : i32, i32
  }
  func.func @transform_1(%arg0: i32, %arg1: i32) -> (i32, i32) {
    %c0_i32 = arith.constant 0 : i32
    %c0_i32_0 = arith.constant 0 : i32
    %c0_i32_1 = arith.constant 0 : i32
    return %c0_i32, %c0_i32_0 : i32, i32
  }
  func.func @transform_2(%arg0: i32, %arg1: i32) -> (i32, i32, i32) {
    %c0_i32 = arith.constant 0 : i32
    %c0_i32_0 = arith.constant 0 : i32
    return %c0_i32, %arg0, %arg1 : i32, i32, i32
  }
  func.func @transform_3(%arg0: i32, %arg1: i32) -> (i32, i32, i32) {
    %c0_i32 = arith.constant 0 : i32
    %c0_i32_0 = arith.constant 0 : i32
    return %c0_i32, %arg0, %arg1 : i32, i32, i32
  }
  func.func @transform_4(%arg0: i32, %arg1: i32) -> (i32, i32, i32) {
    %c0_i32 = arith.constant 0 : i32
    %c0_i32_0 = arith.constant 0 : i32
    return %c0_i32, %arg0, %arg1 : i32, i32, i32
  }
}

</mosaic_0001>

<bundles_post_ra>
// kernel: tpu_custom_call.1
= control target key start
LH: loop header
LB: loop body
LE: loop exit
PB: predicated region body
PF: predicated region fallthrough
CT: control target
= control target key end

     0   :  { %10 = vsyncpa [#allocation5], 0  ;;  %s2266_s0 = inlined_call_operand.hbm [shape: f32[2,4], index: 0, kind: input, shape index: {}]   ;;  %s2267_s1 = inlined_call_operand.vmem [shape: f32[2,4], index: 1, kind: input, shape index: {}]   ;;  %s2268_s2 = inlined_call_operand.hbm [shape: f32[4,128,128], index: 2, kind: input, shape index: {}]   ;;  %s2269_s3 = inlined_call_operand.hbm [shape: bf16[2,128,128], index: 3, kind: output, shape index: {0}]   ;;  %s2270_s4 = inlined_call_operand.hbm [shape: bf16[2,128,128], index: 4, kind: output, shape index: {1}]  }
   0x1   :  { %11 = vsyncpa [#allocation6], 0 }
   0x2   :  { %12 = vsyncpa [#allocation3], 0 }
   0x3   :  { %13 = vsyncpa [#allocation4], 0 }
   0x4   :  { %14 = vsyncpa [#allocation11], 0  ;;  %s29_s17 = sshll.u32 %s2267_s1, 4  ;;  %s1362_s20 = scalar_lea.hbm %s2266_s0, 32  ;;  %s30_s17 = int_to_ptr.vmem [resolvable:$true] %s29_s17 }
   0x5   :  { %p1363_p0 = scmp.ne.s32.totalorder %s2266_s0, %s1362_s20  ;;  %p1366_p1 = scmp.lt.u32.totalorder %s1362_s20, %s2266_s0 }
   0x7   :  { %p1368_p2 = pnand %p1366_p1, %p1363_p0 }
   0x9   :  { %1371 = shalt.err (!%p1368_p2)
}
   0xa   :  { %s1460_s25 = smov [#allocation2]   ;;  %s1372_s1 = scalar_lea.vmem %s30_s17, 32 }
   0xb   :  { %22 = dma.hbm_to_smem %s2266_s0, 32, %s1460_s25, [#allocation5]  }
   0xc   :  { %p1373_p3 = scmp.ne.s32.totalorder %s30_s17, %s1372_s1  ;;  %p1377_p4 = scmp.lt.s32.totalorder %s30_s17, %s30_s17 }
   0xd   :  { %p1378_p5 = scmp.lt.s32.totalorder %s1372_s1, %s1372_s1 }
   0xf   :  { %p1379_p6 = por %p1378_p5, %p1377_p4 }
  0x11   :  { %p1380_p7 = pnand %p1379_p6, %p1373_p3 }
  0x13   :  { %1383 = shalt.err (!%p1380_p7)
}
  0x14   :  { %s1461_s28 = smov [#allocation7]   ;;  %s1462_s29 = smov [#allocation8]  }
  0x15   :  { %32 = dma.vmem_to_smem %s30_s17, 32, %s1461_s28, [#allocation6]  }
  0x16   :  { %s38_s30 = sshll.u32 %s1462_s29, 4  ;;  %s1384_s7 = scalar_lea.hbm %s2268_s2, 8192  ;;  %s39_s30 = int_to_ptr.vmem [resolvable:$true] %s38_s30 }
  0x17   :  { %p1385_p8 = scmp.ne.s32.totalorder %s2268_s2, %s1384_s7  ;;  %p1388_p9 = scmp.lt.u32.totalorder %s1384_s7, %s2268_s2 }
  0x19   :  { %p1390_p10 = pnand %p1388_p9, %p1385_p8 }
  0x1b   :  { %1393 = shalt.err (!%p1390_p10)
}
  0x1c   :  { %s1394_s11 = scalar_lea.vmem %s39_s30, 8192  ;;  %p1399_p12 = scmp.lt.s32.totalorder %s39_s30, %s39_s30 }
  0x1d   :  { %p1395_p11 = scmp.ne.s32.totalorder %s39_s30, %s1394_s11  ;;  %p1400_p13 = scmp.lt.s32.totalorder %s1394_s11, %s1394_s11 }
  0x1f   :  { %p1401_p0 = por %p1400_p13, %p1399_p12 }
  0x21   :  { %p1402_p1 = pnand %p1401_p0, %p1395_p11 }
  0x23   :  { %1405 = shalt.err (!%p1402_p1)
}
  0x24   :  { %s1463_s12 = smov 128   ;;  %s1464_s13 = smov 8  }
  0x25   :  { %44 = dma.hbm_to_vmem [thread:$0]  %s2268_s2, 8192, %s39_s30, [#allocation3], %s1463_s12, %s1463_s12, %s1464_s13  }
  0x26   :  { %1450 = dma.done.wait [#allocation5], 32  }
  0x27   :  { %1451 = vsyncadd [#allocation5], 4294967264 }
  0x28   :  { %1452 = dma.done.wait [#allocation6], 32  }
  0x29   :  { %1453 = vsyncadd [#allocation6], 4294967264 }
  0x2a   :  { %1454 = dma.done.wait [#allocation3], 8192  }
  0x2b   :  { %1455 = vsyncadd [#allocation3], 4294959104 }
  0x2c   :  { %54 = sfence }
  0x2d   :  { %s55_s16 = sld [smem:[#allocation2]]  ;;  %s1023_s17 = sld [smem:[#allocation2 + $0x1]]  ;;  %v1521_v0 = vld [vmem:[#allocation8] sm:$0xff]  ;;  %v1523_v1 = vld [vmem:[#allocation8 + $0x8] sm:$0xff]  ;;  %v1525_v2 = vld [vmem:[#allocation8 + $0x10] sm:$0xff] }
  0x2e   :  { %s1025_s18 = sld [smem:[#allocation2 + $0x2]]  ;;  %s1027_s19 = sld [smem:[#allocation2 + $0x3]]  ;;  %v1527_v3 = vld [vmem:[#allocation8 + $0x80] sm:$0xff]  ;;  %v1529_v4 = vld [vmem:[#allocation8 + $0x88] sm:$0xff]  ;;  %v1547_v13 = vld [vmem:[#allocation8 + $0x18] sm:$0xff] }
  0x2f   :  { %v1531_v5 = vld [vmem:[#allocation8 + $0x100] sm:$0xff]  ;;  %v1535_v7 = vld [vmem:[#allocation8 + $0x108] sm:$0xff]  ;;  %v1551_v15 = vld [vmem:[#allocation8 + $0x90] sm:$0xff]  ;;  %s1731_s2 = sld [smem:[#allocation7]]  ;;  %s1739_s20 = sld [smem:[#allocation7 + $0x1]] }
  0x30   :  { %v1537_v8 = vld [vmem:[#allocation8 + $0x180] sm:$0xff]  ;;  %v1539_v9 = vld [vmem:[#allocation8 + $0x188] sm:$0xff]  ;;  %v1553_v16 = vld [vmem:[#allocation8 + $0x98] sm:$0xff]  ;;  %s1741_s21 = sld [smem:[#allocation7 + $0x2]]  ;;  %s1771_s22 = sld [smem:[#allocation7 + $0x3]] }
  0x31   :  { %v1563_v21 = vld [vmem:[#allocation8 + $0x110] sm:$0xff]  ;;  %v1565_v22 = vld [vmem:[#allocation8 + $0x118] sm:$0xff]  ;;  %v1583_v33 = vld [vmem:[#allocation8 + $0x20] sm:$0xff]  ;;  %s1899_s23 = sld [smem:[#allocation2 + $0x80]]  ;;  %s1905_s24 = sld [smem:[#allocation2 + $0x81]] }
  0x32   :  { %2341 = vst [vmem:[#allocation17_spill] sm:$0xff] %v1565_v22  ;;  %v1567_v23 = vld [vmem:[#allocation8 + $0x190] sm:$0xff]  ;;  %v1577_v28 = vld [vmem:[#allocation8 + $0x198] sm:$0xff]  ;;  %v1585_v34 = vld [vmem:[#allocation8 + $0x28] sm:$0xff]  ;;  %s1907_s25 = sld [smem:[#allocation2 + $0x82]]  ;;  %s1921_s26 = sld [smem:[#allocation2 + $0x83]] }
  0x33   :  { %v1533_v6 = vstv %s55_s16  ;;  %v1545_v12 = vstv %s1023_s17  ;;  %2342 = vst [vmem:[#allocation18_spill] sm:$0xff] %v1567_v23  ;;  %v1587_v35 = vld [vmem:[#allocation8 + $0xa0] sm:$0xff]  ;;  %v1597_v40 = vld [vmem:[#allocation8 + $0xa8] sm:$0xff]  ;;  %v1617_v57 = vld [vmem:[#allocation8 + $0x30] sm:$0xff]  ;;  %s2047_s27 = sld [smem:[#allocation7 + $0x80]]  ;;  %s2053_s1 = sld [smem:[#allocation7 + $0x81]] }
  0x34   :  { %v73_v10 = vmul.f32 %v1533_v6, %v1521_v0  ;;  %v74_v11 = vmul.f32 %v1533_v6, %v1523_v1  ;;  %v75_v14 = vmul.f32 %v1533_v6, %v1525_v2  ;;  %v126_v17 = vmul.f32 %v1545_v12, %v1527_v3  ;;  %v1601_v45 = vld [vmem:[#allocation8 + $0x120] sm:$0xff]  ;;  %v1603_v46 = vld [vmem:[#allocation8 + $0x128] sm:$0xff]  ;;  %2346 = vst [vmem:[#allocation22_spill] sm:$0xff] %v1617_v57  ;;  %v1623_v62 = vld [vmem:[#allocation8 + $0x38] sm:$0xff]  ;;  %s2055_s28 = sld [smem:[#allocation7 + $0x82]]  ;;  %s2069_s29 = sld [smem:[#allocation7 + $0x83]] }
  0x35   :  { %v127_v18 = vmul.f32 %v1545_v12, %v1529_v4  ;;  %v1559_v19 = vstv %s1025_s18  ;;  %v1561_v20 = vstv %s1027_s19  ;;  %v76_v31 = vmul.f32 %v1533_v6, %v1547_v13  ;;  %2343 = vst [vmem:[#allocation19_spill] sm:$0xff] %v1603_v46  ;;  %v1611_v51 = vld [vmem:[#allocation8 + $0x1a0] sm:$0xff]  ;;  %v1615_v56 = vld [vmem:[#allocation8 + $0x1a8] sm:$0xff]  ;;  %2347 = vst [vmem:[#allocation23_spill] sm:$0xff] %v1623_v62  ;;  %s1465_s30 = smov [#allocation9]  }
  0x36   :  { %v211_v24 = vmul.f32 %v1559_v19, %v1531_v5  ;;  %v212_v25 = vmul.f32 %v1559_v19, %v1535_v7  ;;  %v296_v26 = vmul.f32 %v1561_v20, %v1537_v8  ;;  %v297_v27 = vmul.f32 %v1561_v20, %v1539_v9  ;;  %2344 = vst [vmem:[#allocation20_spill] sm:$0xff] %v1611_v51  ;;  %v1625_v63 = vld [vmem:[#allocation8 + $0xb0] sm:$0xff]  ;;  %s993_s5 = sshll.u32 %s1465_s30, 4  ;;  %s2117_s5 = int_to_ptr.vmem [resolvable:$true] %s993_s5 }
  0x37   :  { %v142_v29 = vadd.f32 %v126_v17, %v73_v10  ;;  %v143_v30 = vadd.f32 %v127_v18, %v74_v11  ;;  %v128_v32 = vmul.f32 %v1545_v12, %v1551_v15  ;;  %v129_v36 = vmul.f32 %v1545_v12, %v1553_v16  ;;  %2345 = vst [vmem:[#allocation21_spill] sm:$0xff] %v1615_v56  ;;  %v1627_v10 = vld [vmem:[#allocation8 + $0xb8] sm:$0xff]  ;;  %s1406_s6 = scalar_lea.vmem %s2117_s5, 2048  ;;  %p1411_p3 = scmp.lt.s32.totalorder %s2117_s5, %s2117_s5 }
  0x38   :  { %v213_v37 = vmul.f32 %v1559_v19, %v1563_v21  ;;  %v214_v38 = vmul.f32 %v1559_v19, %v1565_v22  ;;  %v298_v39 = vmul.f32 %v1561_v20, %v1567_v23  ;;  %v299_v44 = vmul.f32 %v1561_v20, %v1577_v28  ;;  %2348 = vst [vmem:[#allocation24_spill] sm:$0xff] %v1625_v63  ;;  %p1407_p2 = scmp.ne.s32.totalorder %s2117_s5, %s1406_s6  ;;  %p1412_p4 = scmp.lt.s32.totalorder %s1406_s6, %s1406_s6 }
  0x39   :  { %v227_v41 = vadd.f32 %v211_v24, %v142_v29  ;;  %v228_v42 = vadd.f32 %v212_v25, %v143_v30  ;;  %v144_v43 = vadd.f32 %v128_v32, %v75_v14  ;;  %v145_v47 = vadd.f32 %v129_v36, %v76_v31  ;;  %2349 = vst [vmem:[#allocation25_spill] sm:$0xff] %v1627_v10  ;;  %v1631_v24 = vld [vmem:[#allocation8 + $0x130] sm:$0xff]  ;;  %v1633_v25 = vld [vmem:[#allocation8 + $0x138] sm:$0xff] }
  0x3a   :  { %v77_v48 = vmul.f32 %v1533_v6, %v1583_v33  ;;  %v78_v49 = vmul.f32 %v1533_v6, %v1585_v34  ;;  %v130_v50 = vmul.f32 %v1545_v12, %v1587_v35  ;;  %v131_v55 = vmul.f32 %v1545_v12, %v1597_v40  ;;  %2350 = vst [vmem:[#allocation26_spill] sm:$0xff] %v1631_v24  ;;  %v1639_v31 = vld [vmem:[#allocation8 + $0x1b0] sm:$0xff]  ;;  %v1641_v32 = vld [vmem:[#allocation8 + $0x1b8] sm:$0xff]  ;;  %p1413_p5 = por %p1412_p4, %p1411_p3 }
  0x3b   :  { %v312_v52 = vadd.f32 %v296_v26, %v227_v41  ;;  %v313_v53 = vadd.f32 %v297_v27, %v228_v42  ;;  %v229_v54 = vadd.f32 %v213_v37, %v144_v43  ;;  %v230_v58 = vadd.f32 %v214_v38, %v145_v47  ;;  %2351 = vst [vmem:[#allocation27_spill] sm:$0xff] %v1633_v25  ;;  %v1649_v41 = vld [vmem:[#allocation8 + $0x40] sm:$0xff]  ;;  %v1651_v42 = vld [vmem:[#allocation8 + $0x48] sm:$0xff] }
  0x3c   :  { %v146_v59 = vadd.f32 %v130_v50, %v77_v48  ;;  %v215_v60 = vmul.f32 %v1559_v19, %v1601_v45  ;;  %v216_v61 = vmul.f32 %v1559_v19, %v1603_v46  ;;  %v147_v17 = vadd.f32 %v131_v55, %v78_v49  ;;  %2352 = vst [vmem:[#allocation28_spill] sm:$0xff] %v1639_v31  ;;  %v1653_v43 = vld [vmem:[#allocation8 + $0xc0] sm:$0xff]  ;;  %v1659_v50 = vld [vmem:[#allocation8 + $0xc8] sm:$0xff]  ;;  %p1414_p6 = pnand %p1413_p5, %p1407_p2 }
  0x3d   :  { %v1168_v11 = vpack.c.bf16 %v313_v53, %v312_v52  ;;  %v314_v14 = vadd.f32 %v298_v39, %v229_v54  ;;  %v300_v18 = vmul.f32 %v1561_v20, %v1611_v51  ;;  %v315_v26 = vadd.f32 %v299_v44, %v230_v58  ;;  %2353 = vst [vmem:[#allocation29_spill] sm:$0xff] %v1649_v41  ;;  %v1663_v58 = vld [vmem:[#allocation8 + $0x140] sm:$0xff] }
  0x3e   :  { %v231_v27 = vadd.f32 %v215_v60, %v146_v59  ;;  %v301_v29 = vmul.f32 %v1561_v20, %v1615_v56  ;;  %v79_v30 = vmul.f32 %v1533_v6, %v1617_v57  ;;  %v232_v36 = vadd.f32 %v216_v61, %v147_v17  ;;  %2354 = vst [vmem:[#allocation30_spill] sm:$0xff] %v1651_v42  ;;  %v1665_v59 = vld [vmem:[#allocation8 + $0x148] sm:$0xff]  ;;  %v1667_v60 = vld [vmem:[#allocation8 + $0x1c0] sm:$0xff] }
  0x3f   :  { %1169 = vst [vmem:[#allocation9] sm:$0xff] %v1168_v11   ;;  %v80_v37 = vmul.f32 %v1533_v6, %v1623_v62  ;;  %v132_v38 = vmul.f32 %v1545_v12, %v1625_v63  ;;  %v133_v39 = vmul.f32 %v1545_v12, %v1627_v10  ;;  %2355 = vst [vmem:[#allocation31_spill] sm:$0xff] %v1653_v43 }
  0x40   :  { %v1173_v44 = vpack.c.bf16 %v315_v26, %v314_v14  ;;  %v316_v47 = vadd.f32 %v300_v18, %v231_v27  ;;  %v217_v48 = vmul.f32 %v1559_v19, %v1631_v24  ;;  %v218_v49 = vmul.f32 %v1559_v19, %v1633_v25  ;;  %2356 = vst [vmem:[#allocation32_spill] sm:$0xff] %v1659_v50  ;;  %v1677_v18 = vld [vmem:[#allocation8 + $0x1c8] sm:$0xff] }
  0x41   :  { %v317_v52 = vadd.f32 %v301_v29, %v232_v36  ;;  %v148_v53 = vadd.f32 %v132_v38, %v79_v30  ;;  %v149_v54 = vadd.f32 %v133_v39, %v80_v37  ;;  %v302_v55 = vmul.f32 %v1561_v20, %v1639_v31  ;;  %2357 = vst [vmem:[#allocation33_spill] sm:$0xff] %v1663_v58  ;;  %v1681_v36 = vld [vmem:[#allocation8 + $0x50] sm:$0xff]  ;;  %v1683_v37 = vld [vmem:[#allocation8 + $0x58] sm:$0xff] }
  0x42   :  { %2358 = vst [vmem:[#allocation34_spill] sm:$0xff] %v1665_v59  ;;  %2359 = vst [vmem:[#allocation35_spill] sm:$0xff] %v1667_v60  ;;  %v303_v61 = vmul.f32 %v1561_v20, %v1641_v32  ;;  %v81_v11 = vmul.f32 %v1533_v6, %v1649_v41  ;;  %v82_v14 = vmul.f32 %v1533_v6, %v1651_v42  ;;  %v1685_v38 = vld [vmem:[#allocation8 + $0xd0] sm:$0xff] }
  0x43   :  { %1325 = vst [vmem:[#allocation9 + $0x8] sm:$0xff] %v1173_v44   ;;  %v134_v17 = vmul.f32 %v1545_v12, %v1653_v43  ;;  %2360 = vst [vmem:[#allocation36_spill] sm:$0xff] %v1677_v18  ;;  %v1178_v26 = vpack.c.bf16 %v317_v52, %v316_v47  ;;  %v233_v27 = vadd.f32 %v217_v48, %v148_v53  ;;  %v1693_v48 = vld [vmem:[#allocation8 + $0xd8] sm:$0xff]  ;;  %v1765_v41 = vld [vmem:[#allocation8 + $0x170] sm:$0xff] }
  0x44   :  { %v234_v29 = vadd.f32 %v218_v49, %v149_v54  ;;  %v135_v30 = vmul.f32 %v1545_v12, %v1659_v50  ;;  %2361 = vst [vmem:[#allocation37_spill] sm:$0xff] %v1681_v36  ;;  %2362 = vst [vmem:[#allocation38_spill] sm:$0xff] %v1683_v37  ;;  %v219_v44 = vmul.f32 %v1559_v19, %v1663_v58  ;;  %v1695_v49 = vld [vmem:[#allocation8 + $0x150] sm:$0xff] }
  0x45   :  { %2363 = vst [vmem:[#allocation39_spill] sm:$0xff] %v1685_v38  ;;  %v150_v39 = vadd.f32 %v134_v17, %v81_v11  ;;  %v220_v43 = vmul.f32 %v1559_v19, %v1665_v59  ;;  %v304_v47 = vmul.f32 %v1561_v20, %v1667_v60  ;;  %2364 = vst [vmem:[#allocation40_spill] sm:$0xff] %v1693_v48  ;;  %v1699_v17 = vld [vmem:[#allocation8 + $0x158] sm:$0xff]  ;;  %v1701_v58 = vld [vmem:[#allocation8 + $0x1d0] sm:$0xff] }
  0x46   :  { %2365 = vst [vmem:[#allocation41_spill] sm:$0xff] %v1695_v49  ;;  %1326 = vst [vmem:[#allocation9 + $0x10] sm:$0xff] %v1178_v26   ;;  %v318_v52 = vadd.f32 %v302_v55, %v233_v27  ;;  %v319_v53 = vadd.f32 %v303_v61, %v234_v29  ;;  %v151_v54 = vadd.f32 %v135_v30, %v82_v14  ;;  %v1709_v55 = vld [vmem:[#allocation8 + $0x1d8] sm:$0xff]  ;;  %v1711_v61 = vld [vmem:[#allocation8 + $0x60] sm:$0xff] }
  0x47   :  { %v305_v11 = vmul.f32 %v1561_v20, %v1677_v18  ;;  %2366 = vst [vmem:[#allocation42_spill] sm:$0xff] %v1699_v17  ;;  %2367 = vst [vmem:[#allocation43_spill] sm:$0xff] %v1701_v58  ;;  %v235_v50 = vadd.f32 %v219_v44, %v150_v39  ;;  %v83_v59 = vmul.f32 %v1533_v6, %v1681_v36  ;;  %v1717_v39 = vld [vmem:[#allocation8 + $0x68] sm:$0xff]  ;;  %v1719_v44 = vld [vmem:[#allocation8 + $0xe0] sm:$0xff] }
  0x48   :  { %v84_v60 = vmul.f32 %v1533_v6, %v1683_v37  ;;  %v136_v26 = vmul.f32 %v1545_v12, %v1685_v38  ;;  %2368 = vst [vmem:[#allocation44_spill] sm:$0xff] %v1709_v55  ;;  %2369 = vst [vmem:[#allocation45_spill] sm:$0xff] %v1711_v61  ;;  %v1183_v14 = vpack.c.bf16 %v319_v53, %v318_v52  ;;  %v1721_v37 = vld [vmem:[#allocation8 + $0xe8] sm:$0xff]  ;;  %v1727_v52 = vld [vmem:[#allocation8 + $0x160] sm:$0xff] }
  0x49   :  { %v236_v27 = vadd.f32 %v220_v43, %v151_v54  ;;  %v137_v29 = vmul.f32 %v1545_v12, %v1693_v48  ;;  %v221_v30 = vmul.f32 %v1559_v19, %v1695_v49  ;;  %2370 = vst [vmem:[#allocation46_spill] sm:$0xff] %v1717_v39  ;;  %2371 = vst [vmem:[#allocation47_spill] sm:$0xff] %v1719_v44  ;;  %v1729_v53 = vld [vmem:[#allocation8 + $0x168] sm:$0xff] }
  0x4a   :  { %2372 = vst [vmem:[#allocation48_spill] sm:$0xff] %v1721_v37  ;;  %v320_v36 = vadd.f32 %v304_v47, %v235_v50  ;;  %v152_v38 = vadd.f32 %v136_v26, %v83_v59  ;;  %v222_v18 = vmul.f32 %v1559_v19, %v1699_v17  ;;  %v306_v43 = vmul.f32 %v1561_v20, %v1701_v58  ;;  %v1737_v59 = vld [vmem:[#allocation8 + $0x1e0] sm:$0xff] }
  0x4b   :  { %2373 = vst [vmem:[#allocation49_spill] sm:$0xff] %v1729_v53  ;;  %1327 = vst [vmem:[#allocation9 + $0x18] sm:$0xff] %v1183_v14   ;;  %v321_v54 = vadd.f32 %v305_v11, %v236_v27  ;;  %v153_v49 = vadd.f32 %v137_v29, %v84_v60  ;;  %v307_v48 = vmul.f32 %v1561_v20, %v1709_v55  ;;  %v1749_v14 = vld [vmem:[#allocation8 + $0x1e8] sm:$0xff]  ;;  %v1751_v27 = vld [vmem:[#allocation8 + $0x70] sm:$0xff] }
  0x4c   :  { %v85_v50 = vmul.f32 %v1533_v6, %v1711_v61  ;;  %v237_v47 = vadd.f32 %v221_v30, %v152_v38  ;;  %v86_v26 = vmul.f32 %v1533_v6, %v1717_v39  ;;  %v138_v11 = vmul.f32 %v1545_v12, %v1719_v44  ;;  %2374 = vst [vmem:[#allocation50_spill] sm:$0xff] %v1751_v27  ;;  %v1753_v29 = vld [vmem:[#allocation8 + $0x78] sm:$0xff]  ;;  %v1759_v39 = vld [vmem:[#allocation8 + $0xf0] sm:$0xff] }
  0x4d   :  { %v139_v60 = vmul.f32 %v1545_v12, %v1721_v37  ;;  %2375 = vst [vmem:[#allocation51_spill] sm:$0xff] %v1753_v29  ;;  %v1188_v61 = vpack.c.bf16 %v321_v54, %v320_v36  ;;  %v238_v55 = vadd.f32 %v222_v18, %v153_v49  ;;  %v223_v38 = vmul.f32 %v1559_v19, %v1727_v52  ;;  %v1761_v44 = vld [vmem:[#allocation8 + $0xf8] sm:$0xff]  ;;  %v1769_v18 = vld [vmem:[#allocation8 + $0x1f0] sm:$0xff] }
  0x4e   :  { %v224_v30 = vmul.f32 %v1559_v19, %v1729_v53  ;;  %2376 = vst [vmem:[#allocation52_spill] sm:$0xff] %v1759_v39  ;;  %2377 = vst [vmem:[#allocation53_spill] sm:$0xff] %v1761_v44  ;;  %v322_v58 = vadd.f32 %v306_v43, %v237_v47  ;;  %v154_v37 = vadd.f32 %v138_v11, %v85_v50  ;;  %v1767_v36 = vld [vmem:[#allocation8 + $0x178] sm:$0xff] }
  0x4f   :  { %v155_v17 = vadd.f32 %v139_v60, %v86_v26  ;;  %v308_v42 = vmul.f32 %v1561_v20, %v1737_v59  ;;  %2378 = vst [vmem:[#allocation54_spill] sm:$0xff] %v1765_v41  ;;  %2379 = vst [vmem:[#allocation55_spill] sm:$0xff] %v1767_v36  ;;  %v323_v49 = vadd.f32 %v307_v48, %v238_v55  ;;  %v1783_v55 = vld [vmem:[#allocation8 + $0x1f8] sm:$0xff] }
  0x50   :  { %1328 = vst [vmem:[#allocation9 + $0x20] sm:$0xff] %v1188_v61   ;;  %v309_v54 = vmul.f32 %v1561_v20, %v1749_v14  ;;  %v87_v43 = vmul.f32 %v1533_v6, %v1751_v27  ;;  %v88_v50 = vmul.f32 %v1533_v6, %v1753_v29  ;;  %v239_v47 = vadd.f32 %v223_v38, %v154_v37 }
  0x51   :  { %v240_v26 = vadd.f32 %v224_v30, %v155_v17  ;;  %v140_v11 = vmul.f32 %v1545_v12, %v1759_v39  ;;  %v141_v48 = vmul.f32 %v1545_v12, %v1761_v44  ;;  %v1193_v61 = vpack.c.bf16 %v323_v49, %v322_v58 }
  0x52   :  { %v225_v60 = vmul.f32 %v1559_v19, %v1765_v41  ;;  %v226_v6 = vmul.f32 %v1559_v19, %v1767_v36  ;;  %v310_v37 = vmul.f32 %v1561_v20, %v1769_v18  ;;  %v324_v17 = vadd.f32 %v308_v42, %v239_v47 }
  0x53   :  { %v325_v38 = vadd.f32 %v309_v54, %v240_v26  ;;  %v156_v30 = vadd.f32 %v140_v11, %v87_v43  ;;  %v157_v29 = vadd.f32 %v141_v48, %v88_v50  ;;  %1329 = vst [vmem:[#allocation9 + $0x28] sm:$0xff] %v1193_v61   ;;  %v311_v12 = vmul.f32 %v1561_v20, %v1783_v55 }
  0x54   :  { %v1794_v44 = vstv %s1731_s2  ;;  %v1797_v58 = vstv %s1739_s20  ;;  %v1800_v49 = vstv %s1741_s21  ;;  %v1815_v11 = vstv %s1771_s22 }
  0x55   :  { %v1198_v41 = vpack.c.bf16 %v325_v38, %v324_v17  ;;  %v241_v19 = vadd.f32 %v225_v60, %v156_v30  ;;  %v242_v36 = vadd.f32 %v226_v6, %v157_v29  ;;  %v91_v42 = vmul.f32 %v1794_v44, %v1521_v0 }
  0x56   :  { %v92_v54 = vmul.f32 %v1794_v44, %v1523_v1  ;;  %v160_v43 = vmul.f32 %v1797_v58, %v1527_v3  ;;  %v161_v20 = vmul.f32 %v1797_v58, %v1529_v4  ;;  %v245_v50 = vmul.f32 %v1800_v49, %v1531_v5 }
  0x57   :  { %1330 = vst [vmem:[#allocation9 + $0x30] sm:$0xff] %v1198_v41   ;;  %v326_v47 = vadd.f32 %v310_v37, %v241_v19  ;;  %v327_v26 = vadd.f32 %v311_v12, %v242_v36  ;;  %v246_v29 = vmul.f32 %v1800_v49, %v1535_v7  ;;  %v330_v60 = vmul.f32 %v1815_v11, %v1537_v8 }
  0x58   :  { %v176_v48 = vadd.f32 %v160_v43, %v91_v42  ;;  %v177_v61 = vadd.f32 %v161_v20, %v92_v54  ;;  %v331_v6 = vmul.f32 %v1815_v11, %v1539_v9  ;;  %v93_v38 = vmul.f32 %v1794_v44, %v1525_v2 }
  0x59   :  { %v1203_v17 = vpack.c.bf16 %v327_v26, %v326_v47  ;;  %v94_v41 = vmul.f32 %v1794_v44, %v1547_v13  ;;  %v162_v36 = vmul.f32 %v1797_v58, %v1551_v15  ;;  %v163_v12 = vmul.f32 %v1797_v58, %v1553_v16 }
  0x5a   :  { %v261_v37 = vadd.f32 %v245_v50, %v176_v48  ;;  %v262_v30 = vadd.f32 %v246_v29, %v177_v61  ;;  %v247_v19 = vmul.f32 %v1800_v49, %v1563_v21  ;;  %v248_v54 = vmul.f32 %v1800_v49, %v1565_v22 }
  0x5b   :  { %1331 = vst [vmem:[#allocation9 + $0x38] sm:$0xff] %v1203_v17   ;;  %v178_v42 = vadd.f32 %v162_v36, %v93_v38  ;;  %v332_v43 = vmul.f32 %v1815_v11, %v1567_v23  ;;  %v333_v20 = vmul.f32 %v1815_v11, %v1577_v28  ;;  %v179_v26 = vadd.f32 %v163_v12, %v94_v41 }
  0x5c   :  { %v346_v47 = vadd.f32 %v330_v60, %v261_v37  ;;  %v347_v50 = vadd.f32 %v331_v6, %v262_v30  ;;  %v95_v29 = vmul.f32 %v1794_v44, %v1583_v33  ;;  %v96_v61 = vmul.f32 %v1794_v44, %v1585_v34 }
  0x5d   :  { %v263_v48 = vadd.f32 %v247_v19, %v178_v42  ;;  %v164_v17 = vmul.f32 %v1797_v58, %v1587_v35  ;;  %v165_v38 = vmul.f32 %v1797_v58, %v1597_v40  ;;  %v264_v23 = vadd.f32 %v248_v54, %v179_v26 }
  0x5e   :  { %v1208_v36 = vpack.c.bf16 %v347_v50, %v346_v47  ;;  %v249_v60 = vmul.f32 %v1800_v49, %v1601_v45  ;;  %v250_v6 = vmul.f32 %v1800_v49, %v1603_v46  ;;  %v334_v12 = vmul.f32 %v1815_v11, %v1611_v51 }
  0x5f   :  { %v348_v41 = vadd.f32 %v332_v43, %v263_v48  ;;  %v180_v37 = vadd.f32 %v164_v17, %v95_v29  ;;  %v181_v30 = vadd.f32 %v165_v38, %v96_v61  ;;  %v349_v19 = vadd.f32 %v333_v20, %v264_v23 }
  0x60   :  { %1209 = vst [vmem:[#allocation10] sm:$0xff] %v1208_v36   ;;  %v335_v42 = vmul.f32 %v1815_v11, %v1615_v56  ;;  %v97_v54 = vmul.f32 %v1794_v44, %v1617_v57  ;;  %v98_v47 = vmul.f32 %v1794_v44, %v1623_v62  ;;  %v166_v43 = vmul.f32 %v1797_v58, %v1625_v63 }
  0x61   :  { %v265_v50 = vadd.f32 %v249_v60, %v180_v37  ;;  %v266_v26 = vadd.f32 %v250_v6, %v181_v30  ;;  %v167_v29 = vmul.f32 %v1797_v58, %v1627_v10  ;;  %v1213_v48 = vpack.c.bf16 %v349_v19, %v348_v41  ;;  %v2380_v37 = vld [vmem:[#allocation29_spill] sm:$0xff]  ;;  %v2381_v30 = vld [vmem:[#allocation30_spill] sm:$0xff] }
  0x62   :  { %v251_v23 = vmul.f32 %v1800_v49, %v1631_v24  ;;  %v252_v20 = vmul.f32 %v1800_v49, %v1633_v25  ;;  %v336_v61 = vmul.f32 %v1815_v11, %v1639_v31  ;;  %v182_v36 = vadd.f32 %v166_v43, %v97_v54  ;;  %v2382_v24 = vld [vmem:[#allocation31_spill] sm:$0xff] }
  0x63   :  { %v350_v17 = vadd.f32 %v334_v12, %v265_v50  ;;  %v351_v38 = vadd.f32 %v335_v42, %v266_v26  ;;  %v183_v60 = vadd.f32 %v167_v29, %v98_v47  ;;  %1332 = vst [vmem:[#allocation10 + $0x8] sm:$0xff] %v1213_v48   ;;  %v337_v6 = vmul.f32 %v1815_v11, %v1641_v32  ;;  %v2383_v12 = vld [vmem:[#allocation32_spill] sm:$0xff]  ;;  %v2384_v47 = vld [vmem:[#allocation33_spill] sm:$0xff]  ;;  %v2385_v26 = vld [vmem:[#allocation34_spill] sm:$0xff] }
  0x64   :  { %v99_v41 = vmul.f32 %v1794_v44, %v2380_v37  ;;  %v100_v19 = vmul.f32 %v1794_v44, %v2381_v30  ;;  %v168_v25 = vmul.f32 %v1797_v58, %v2382_v24  ;;  %v267_v63 = vadd.f32 %v251_v23, %v182_v36  ;;  %v2386_v29 = vld [vmem:[#allocation35_spill] sm:$0xff]  ;;  %v2389_v36 = vld [vmem:[#allocation38_spill] sm:$0xff] }
  0x65   :  { %v1218_v10 = vpack.c.bf16 %v351_v38, %v350_v17  ;;  %v268_v31 = vadd.f32 %v252_v20, %v183_v60  ;;  %v169_v42 = vmul.f32 %v1797_v58, %v2383_v12  ;;  %v253_v50 = vmul.f32 %v1800_v49, %v2384_v47  ;;  %v2387_v17 = vld [vmem:[#allocation36_spill] sm:$0xff]  ;;  %v2388_v38 = vld [vmem:[#allocation37_spill] sm:$0xff] }
  0x66   :  { %v184_v54 = vadd.f32 %v168_v25, %v99_v41  ;;  %v254_v43 = vmul.f32 %v1800_v49, %v2385_v26  ;;  %v338_v48 = vmul.f32 %v1815_v11, %v2386_v29  ;;  %v352_v30 = vadd.f32 %v336_v61, %v267_v63  ;;  %v2390_v41 = vld [vmem:[#allocation39_spill] sm:$0xff]  ;;  %v2391_v29 = vld [vmem:[#allocation40_spill] sm:$0xff] }
  0x67   :  { %1333 = vst [vmem:[#allocation10 + $0x10] sm:$0xff] %v1218_v10   ;;  %v353_v37 = vadd.f32 %v337_v6, %v268_v31  ;;  %v185_v24 = vadd.f32 %v169_v42, %v100_v19  ;;  %v339_v23 = vmul.f32 %v1815_v11, %v2387_v17  ;;  %v101_v25 = vmul.f32 %v1794_v44, %v2388_v38  ;;  %v2392_v10 = vld [vmem:[#allocation41_spill] sm:$0xff]  ;;  %v2393_v19 = vld [vmem:[#allocation42_spill] sm:$0xff] }
  0x68   :  { %v269_v20 = vadd.f32 %v253_v50, %v184_v54  ;;  %v102_v60 = vmul.f32 %v1794_v44, %v2389_v36  ;;  %v170_v26 = vmul.f32 %v1797_v58, %v2390_v41  ;;  %v171_v63 = vmul.f32 %v1797_v58, %v2391_v29  ;;  %v2394_v54 = vld [vmem:[#allocation43_spill] sm:$0xff] }
  0x69   :  { %v1223_v47 = vpack.c.bf16 %v353_v37, %v352_v30  ;;  %v270_v12 = vadd.f32 %v254_v43, %v185_v24  ;;  %v255_v31 = vmul.f32 %v1800_v49, %v2392_v10  ;;  %v256_v42 = vmul.f32 %v1800_v49, %v2393_v19  ;;  %v2395_v24 = vld [vmem:[#allocation44_spill] sm:$0xff]  ;;  %v2396_v43 = vld [vmem:[#allocation45_spill] sm:$0xff] }
  0x6a   :  { %v354_v61 = vadd.f32 %v338_v48, %v269_v20  ;;  %v186_v6 = vadd.f32 %v170_v26, %v101_v25  ;;  %v340_v50 = vmul.f32 %v1815_v11, %v2394_v54  ;;  %v187_v37 = vadd.f32 %v171_v63, %v102_v60  ;;  %v2397_v48 = vld [vmem:[#allocation46_spill] sm:$0xff]  ;;  %v2398_v25 = vld [vmem:[#allocation47_spill] sm:$0xff] }
  0x6b   :  { %1334 = vst [vmem:[#allocation10 + $0x18] sm:$0xff] %v1223_v47   ;;  %v355_v41 = vadd.f32 %v339_v23, %v270_v12  ;;  %v341_v30 = vmul.f32 %v1815_v11, %v2395_v24  ;;  %v103_v29 = vmul.f32 %v1794_v44, %v2396_v43  ;;  %v104_v20 = vmul.f32 %v1794_v44, %v2397_v48  ;;  %v2399_v47 = vld [vmem:[#allocation48_spill] sm:$0xff] }
  0x6c   :  { %v271_v26 = vadd.f32 %v255_v31, %v186_v6  ;;  %v172_v54 = vmul.f32 %v1797_v58, %v2398_v25  ;;  %v173_v12 = vmul.f32 %v1797_v58, %v2399_v47  ;;  %v272_v60 = vadd.f32 %v256_v42, %v187_v37  ;;  %v2400_v42 = vld [vmem:[#allocation51_spill] sm:$0xff] }
  0x6d   :  { %v1228_v23 = vpack.c.bf16 %v355_v41, %v354_v61  ;;  %v257_v63 = vmul.f32 %v1800_v49, %v1727_v52  ;;  %v258_v43 = vmul.f32 %v1800_v49, %v1729_v53  ;;  %v342_v6 = vmul.f32 %v1815_v11, %v1737_v59 }
  0x6e   :  { %v356_v24 = vadd.f32 %v340_v50, %v271_v26  ;;  %v188_v19 = vadd.f32 %v172_v54, %v103_v29  ;;  %v189_v31 = vadd.f32 %v173_v12, %v104_v20  ;;  %v357_v25 = vadd.f32 %v341_v30, %v272_v60  ;;  %v2401_v26 = vld [vmem:[#allocation53_spill] sm:$0xff]  ;;  %v2402_v12 = vld [vmem:[#allocation54_spill] sm:$0xff]  ;;  %v2403_v60 = vld [vmem:[#allocation55_spill] sm:$0xff] }
  0x6f   :  { %1335 = vst [vmem:[#allocation10 + $0x20] sm:$0xff] %v1228_v23   ;;  %v343_v41 = vmul.f32 %v1815_v11, %v1749_v14  ;;  %v105_v61 = vmul.f32 %v1794_v44, %v1751_v27  ;;  %v106_v37 = vmul.f32 %v1794_v44, %v2400_v42  ;;  %v174_v50 = vmul.f32 %v1797_v58, %v1759_v39 }
  0x70   :  { %v273_v29 = vadd.f32 %v257_v63, %v188_v19  ;;  %v274_v54 = vadd.f32 %v258_v43, %v189_v31  ;;  %v175_v30 = vmul.f32 %v1797_v58, %v2401_v26  ;;  %v1233_v20 = vpack.c.bf16 %v357_v25, %v356_v24 }
  0x71   :  { %v259_v23 = vmul.f32 %v1800_v49, %v2402_v12  ;;  %v260_v27 = vmul.f32 %v1800_v49, %v2403_v60  ;;  %v344_v44 = vmul.f32 %v1815_v11, %v1769_v18  ;;  %v190_v63 = vadd.f32 %v174_v50, %v105_v61 }
  0x72   :  { %v358_v42 = vadd.f32 %v342_v6, %v273_v29  ;;  %v359_v19 = vadd.f32 %v343_v41, %v274_v54  ;;  %v191_v43 = vadd.f32 %v175_v30, %v106_v37  ;;  %1336 = vst [vmem:[#allocation10 + $0x28] sm:$0xff] %v1233_v20   ;;  %v345_v31 = vmul.f32 %v1815_v11, %v1783_v55 }
  0x73   :  { %v1942_v58 = vstv %s1899_s23  ;;  %v1945_v24 = vstv %s1905_s24  ;;  %v1948_v25 = vstv %s1907_s25  ;;  %v275_v49 = vadd.f32 %v259_v23, %v190_v63 }
  0x74   :  { %v1238_v12 = vpack.c.bf16 %v359_v19, %v358_v42  ;;  %v276_v60 = vadd.f32 %v260_v27, %v191_v43  ;;  %v540_v6 = vmul.f32 %v1942_v58, %v1521_v0  ;;  %v541_v41 = vmul.f32 %v1942_v58, %v1523_v1 }
  0x75   :  { %v592_v61 = vmul.f32 %v1945_v24, %v1527_v3  ;;  %v593_v11 = vmul.f32 %v1945_v24, %v1529_v4  ;;  %v676_v37 = vmul.f32 %v1948_v25, %v1531_v5  ;;  %v360_v29 = vadd.f32 %v344_v44, %v275_v49 }
  0x76   :  { %1337 = vst [vmem:[#allocation10 + $0x30] sm:$0xff] %v1238_v12   ;;  %v361_v42 = vadd.f32 %v345_v31, %v276_v60  ;;  %v677_v27 = vmul.f32 %v1948_v25, %v1535_v7  ;;  %v1963_v54 = vstv %s1921_s26  ;;  %v542_v63 = vmul.f32 %v1942_v58, %v1525_v2 }
  0x77   :  { %v608_v50 = vadd.f32 %v592_v61, %v540_v6  ;;  %v609_v30 = vadd.f32 %v593_v11, %v541_v41  ;;  %v760_v20 = vmul.f32 %v1963_v54, %v1537_v8  ;;  %v761_v23 = vmul.f32 %v1963_v54, %v1539_v9  ;;  %v2404_v61 = vld [vmem:[#allocation18_spill] sm:$0xff] }
  0x78   :  { %v1243_v19 = vpack.c.bf16 %v361_v42, %v360_v29  ;;  %v543_v12 = vmul.f32 %v1942_v58, %v1547_v13  ;;  %v594_v60 = vmul.f32 %v1945_v24, %v1551_v15  ;;  %v595_v31 = vmul.f32 %v1945_v24, %v1553_v16 }
  0x79   :  { %v692_v44 = vadd.f32 %v676_v37, %v608_v50  ;;  %v693_v43 = vadd.f32 %v677_v27, %v609_v30  ;;  %v678_v49 = vmul.f32 %v1948_v25, %v1563_v21  ;;  %v679_v41 = vmul.f32 %v1948_v25, %v1565_v22 }
  0x7a   :  { %1338 = vst [vmem:[#allocation10 + $0x38] sm:$0xff] %v1243_v19   ;;  %v610_v6 = vadd.f32 %v594_v60, %v542_v63  ;;  %v762_v11 = vmul.f32 %v1963_v54, %v2404_v61  ;;  %v763_v29 = vmul.f32 %v1963_v54, %v1577_v28  ;;  %v611_v27 = vadd.f32 %v595_v31, %v543_v12 }
  0x7b   :  { %v776_v42 = vadd.f32 %v760_v20, %v692_v44  ;;  %v777_v37 = vadd.f32 %v761_v23, %v693_v43  ;;  %v544_v50 = vmul.f32 %v1942_v58, %v1583_v33  ;;  %v545_v19 = vmul.f32 %v1942_v58, %v1585_v34 }
  0x7c   :  { %v694_v30 = vadd.f32 %v678_v49, %v610_v6  ;;  %v596_v63 = vmul.f32 %v1945_v24, %v1587_v35  ;;  %v597_v60 = vmul.f32 %v1945_v24, %v1597_v40  ;;  %v695_v22 = vadd.f32 %v679_v41, %v611_v27 }
  0x7d   :  { %v1248_v61 = vpack.c.bf16 %v777_v37, %v776_v42  ;;  %v680_v20 = vmul.f32 %v1948_v25, %v1601_v45  ;;  %v681_v23 = vmul.f32 %v1948_v25, %v1603_v46  ;;  %v764_v31 = vmul.f32 %v1963_v54, %v1611_v51  ;;  %v2405_v46 = vld [vmem:[#allocation24_spill] sm:$0xff] }
  0x7e   :  { %v778_v12 = vadd.f32 %v762_v11, %v694_v30  ;;  %v612_v44 = vadd.f32 %v596_v63, %v544_v50  ;;  %v613_v43 = vadd.f32 %v597_v60, %v545_v19  ;;  %v779_v49 = vadd.f32 %v763_v29, %v695_v22  ;;  %v2406_v50 = vld [vmem:[#allocation25_spill] sm:$0xff]  ;;  %v2408_v29 = vld [vmem:[#allocation27_spill] sm:$0xff]  ;;  %v2409_v60 = vld [vmem:[#allocation28_spill] sm:$0xff] }
  0x7f   :  { %1249 = vst [vmem:[#allocation9 + $0x40] sm:$0xff] %v1248_v61   ;;  %v765_v6 = vmul.f32 %v1963_v54, %v1615_v56  ;;  %v546_v41 = vmul.f32 %v1942_v58, %v1617_v57  ;;  %v547_v42 = vmul.f32 %v1942_v58, %v1623_v62  ;;  %v598_v11 = vmul.f32 %v1945_v24, %v2405_v46  ;;  %v2407_v61 = vld [vmem:[#allocation26_spill] sm:$0xff] }
  0x80   :  { %v696_v37 = vadd.f32 %v680_v20, %v612_v44  ;;  %v697_v27 = vadd.f32 %v681_v23, %v613_v43  ;;  %v599_v30 = vmul.f32 %v1945_v24, %v2406_v50  ;;  %v1253_v19 = vpack.c.bf16 %v779_v49, %v778_v12  ;;  %v2410_v43 = vld [vmem:[#allocation29_spill] sm:$0xff]  ;;  %v2411_v49 = vld [vmem:[#allocation30_spill] sm:$0xff]  ;;  %v2412_v50 = vld [vmem:[#allocation31_spill] sm:$0xff] }
  0x81   :  { %v682_v22 = vmul.f32 %v1948_v25, %v2407_v61  ;;  %v683_v63 = vmul.f32 %v1948_v25, %v2408_v29  ;;  %v766_v57 = vmul.f32 %v1963_v54, %v2409_v60  ;;  %v614_v20 = vadd.f32 %v598_v11, %v546_v41 }
  0x82   :  { %v780_v56 = vadd.f32 %v764_v31, %v696_v37  ;;  %v781_v62 = vadd.f32 %v765_v6, %v697_v27  ;;  %v615_v23 = vadd.f32 %v599_v30, %v547_v42  ;;  %1339 = vst [vmem:[#allocation9 + $0x48] sm:$0xff] %v1253_v19   ;;  %v767_v44 = vmul.f32 %v1963_v54, %v1641_v32  ;;  %v2413_v31 = vld [vmem:[#allocation32_spill] sm:$0xff]  ;;  %v2414_v42 = vld [vmem:[#allocation33_spill] sm:$0xff]  ;;  %v2415_v27 = vld [vmem:[#allocation34_spill] sm:$0xff] }
  0x83   :  { %v548_v12 = vmul.f32 %v1942_v58, %v2410_v43  ;;  %v549_v61 = vmul.f32 %v1942_v58, %v2411_v49  ;;  %v600_v29 = vmul.f32 %v1945_v24, %v2412_v50  ;;  %v698_v51 = vadd.f32 %v682_v22, %v614_v20  ;;  %v2416_v30 = vld [vmem:[#allocation35_spill] sm:$0xff] }
  0x84   :  { %v1258_v46 = vpack.c.bf16 %v781_v62, %v780_v56  ;;  %v699_v60 = vadd.f32 %v683_v63, %v615_v23  ;;  %v601_v6 = vmul.f32 %v1945_v24, %v2413_v31  ;;  %v684_v37 = vmul.f32 %v1948_v25, %v2414_v42  ;;  %v2417_v63 = vld [vmem:[#allocation39_spill] sm:$0xff] }
  0x85   :  { %v616_v41 = vadd.f32 %v600_v29, %v548_v12  ;;  %v685_v11 = vmul.f32 %v1948_v25, %v2415_v27  ;;  %v768_v19 = vmul.f32 %v1963_v54, %v2416_v30  ;;  %v782_v49 = vadd.f32 %v766_v57, %v698_v51  ;;  %v2418_v30 = vld [vmem:[#allocation40_spill] sm:$0xff] }
  0x86   :  { %1340 = vst [vmem:[#allocation9 + $0x50] sm:$0xff] %v1258_v46   ;;  %v783_v43 = vadd.f32 %v767_v44, %v699_v60  ;;  %v617_v50 = vadd.f32 %v601_v6, %v549_v61  ;;  %v769_v56 = vmul.f32 %v1963_v54, %v2387_v17  ;;  %v550_v22 = vmul.f32 %v1942_v58, %v2388_v38  ;;  %v2419_v60 = vld [vmem:[#allocation42_spill] sm:$0xff]  ;;  %v2420_v6 = vld [vmem:[#allocation43_spill] sm:$0xff] }
  0x87   :  { %v700_v62 = vadd.f32 %v684_v37, %v616_v41  ;;  %v551_v29 = vmul.f32 %v1942_v58, %v2389_v36  ;;  %v602_v20 = vmul.f32 %v1945_v24, %v2417_v63  ;;  %v603_v46 = vmul.f32 %v1945_v24, %v2418_v30 }
  0x88   :  { %v1263_v23 = vpack.c.bf16 %v783_v43, %v782_v49  ;;  %v701_v12 = vadd.f32 %v685_v11, %v617_v50  ;;  %v686_v51 = vmul.f32 %v1948_v25, %v2392_v10  ;;  %v687_v44 = vmul.f32 %v1948_v25, %v2419_v60  ;;  %v2421_v50 = vld [vmem:[#allocation44_spill] sm:$0xff]  ;;  %v2422_v11 = vld [vmem:[#allocation45_spill] sm:$0xff] }
  0x89   :  { %v784_v57 = vadd.f32 %v768_v19, %v700_v62  ;;  %v618_v61 = vadd.f32 %v602_v20, %v550_v22  ;;  %v770_v41 = vmul.f32 %v1963_v54, %v2420_v6  ;;  %v619_v43 = vadd.f32 %v603_v46, %v551_v29  ;;  %v2423_v22 = vld [vmem:[#allocation47_spill] sm:$0xff] }
  0x8a   :  { %1341 = vst [vmem:[#allocation9 + $0x58] sm:$0xff] %v1263_v23   ;;  %v785_v37 = vadd.f32 %v769_v56, %v701_v12  ;;  %v771_v49 = vmul.f32 %v1963_v54, %v2421_v50  ;;  %v552_v30 = vmul.f32 %v1942_v58, %v2422_v11  ;;  %v553_v62 = vmul.f32 %v1942_v58, %v2397_v48 }
  0x8b   :  { %v702_v19 = vadd.f32 %v686_v51, %v618_v61  ;;  %v604_v20 = vmul.f32 %v1945_v24, %v2423_v22  ;;  %v605_v56 = vmul.f32 %v1945_v24, %v2399_v47  ;;  %v703_v23 = vadd.f32 %v687_v44, %v619_v43  ;;  %v2424_v44 = vld [vmem:[#allocation50_spill] sm:$0xff]  ;;  %v2425_v43 = vld [vmem:[#allocation51_spill] sm:$0xff] }
  0x8c   :  { %v1268_v29 = vpack.c.bf16 %v785_v37, %v784_v57  ;;  %v688_v12 = vmul.f32 %v1948_v25, %v1727_v52  ;;  %v689_v46 = vmul.f32 %v1948_v25, %v1729_v53  ;;  %v772_v61 = vmul.f32 %v1963_v54, %v1737_v59 }
  0x8d   :  { %v786_v11 = vadd.f32 %v770_v41, %v702_v19  ;;  %v620_v50 = vadd.f32 %v604_v20, %v552_v30  ;;  %v621_v51 = vadd.f32 %v605_v56, %v553_v62  ;;  %v787_v22 = vadd.f32 %v771_v49, %v703_v23  ;;  %v2426_v20 = vld [vmem:[#allocation54_spill] sm:$0xff] }
  0x8e   :  { %1342 = vst [vmem:[#allocation9 + $0x60] sm:$0xff] %v1268_v29   ;;  %v773_v57 = vmul.f32 %v1963_v54, %v1749_v14  ;;  %v554_v37 = vmul.f32 %v1942_v58, %v2424_v44  ;;  %v555_v53 = vmul.f32 %v1942_v58, %v2425_v43  ;;  %v606_v19 = vmul.f32 %v1945_v24, %v1759_v39  ;;  %v2427_v29 = vld [vmem:[#allocation55_spill] sm:$0xff] }
  0x8f   :  { %v704_v30 = vadd.f32 %v688_v12, %v620_v50  ;;  %v705_v41 = vadd.f32 %v689_v46, %v621_v51  ;;  %v607_v49 = vmul.f32 %v1945_v24, %v2401_v26  ;;  %v1273_v62 = vpack.c.bf16 %v787_v22, %v786_v11 }
  0x90   :  { %v690_v56 = vmul.f32 %v1948_v25, %v2426_v20  ;;  %v691_v23 = vmul.f32 %v1948_v25, %v2427_v29  ;;  %v774_v58 = vmul.f32 %v1963_v54, %v1769_v18  ;;  %v622_v12 = vadd.f32 %v606_v19, %v554_v37 }
  0x91   :  { %v788_v43 = vadd.f32 %v772_v61, %v704_v30  ;;  %v789_v50 = vadd.f32 %v773_v57, %v705_v41  ;;  %v623_v46 = vadd.f32 %v607_v49, %v555_v53  ;;  %1343 = vst [vmem:[#allocation9 + $0x68] sm:$0xff] %v1273_v62   ;;  %v775_v51 = vmul.f32 %v1963_v54, %v1783_v55 }
  0x92   :  { %v2090_v39 = vstv %s2047_s27  ;;  %v2093_v24 = vstv %s2053_s1  ;;  %v2096_v11 = vstv %s2055_s28  ;;  %v706_v25 = vadd.f32 %v690_v56, %v622_v12 }
  0x93   :  { %v1278_v22 = vpack.c.bf16 %v789_v50, %v788_v43  ;;  %v707_v29 = vadd.f32 %v691_v23, %v623_v46  ;;  %v558_v61 = vmul.f32 %v2090_v39, %v1521_v0  ;;  %v559_v53 = vmul.f32 %v2090_v39, %v1523_v1  ;;  %v2429_v50 = vld [vmem:[#allocation18_spill] sm:$0xff] }
  0x94   :  { %v626_v54 = vmul.f32 %v2093_v24, %v1527_v3  ;;  %v627_v57 = vmul.f32 %v2093_v24, %v1529_v4  ;;  %v710_v37 = vmul.f32 %v2096_v11, %v1531_v5  ;;  %v790_v43 = vadd.f32 %v774_v58, %v706_v25 }
  0x95   :  { %1344 = vst [vmem:[#allocation9 + $0x70] sm:$0xff] %v1278_v22   ;;  %v791_v30 = vadd.f32 %v775_v51, %v707_v29  ;;  %v711_v0 = vmul.f32 %v2096_v11, %v1535_v7  ;;  %v2111_v41 = vstv %s2069_s29  ;;  %v560_v5 = vmul.f32 %v2090_v39, %v1525_v2  ;;  %v2428_v2 = vld [vmem:[#allocation17_spill] sm:$0xff] }
  0x96   :  { %v642_v19 = vadd.f32 %v626_v54, %v558_v61  ;;  %v643_v49 = vadd.f32 %v627_v57, %v559_v53  ;;  %v794_v1 = vmul.f32 %v2111_v41, %v1537_v8  ;;  %v795_v3 = vmul.f32 %v2111_v41, %v1539_v9 }
  0x97   :  { %v1283_v4 = vpack.c.bf16 %v791_v30, %v790_v43  ;;  %v561_v7 = vmul.f32 %v2090_v39, %v1547_v13  ;;  %v628_v62 = vmul.f32 %v2093_v24, %v1551_v15  ;;  %v629_v9 = vmul.f32 %v2093_v24, %v1553_v16 }
  0x98   :  { %v726_v56 = vadd.f32 %v710_v37, %v642_v19  ;;  %v727_v8 = vadd.f32 %v711_v0, %v643_v49  ;;  %v712_v29 = vmul.f32 %v2096_v11, %v1563_v21  ;;  %v713_v58 = vmul.f32 %v2096_v11, %v2428_v2 }
  0x99   :  { %1345 = vst [vmem:[#allocation9 + $0x78] sm:$0xff] %v1283_v4   ;;  %v644_v23 = vadd.f32 %v628_v62, %v560_v5  ;;  %v796_v13 = vmul.f32 %v2111_v41, %v2429_v50  ;;  %v797_v15 = vmul.f32 %v2111_v41, %v1577_v28  ;;  %v645_v51 = vadd.f32 %v629_v9, %v561_v7 }
  0x9a   :  { %v810_v12 = vadd.f32 %v794_v1, %v726_v56  ;;  %v811_v46 = vadd.f32 %v795_v3, %v727_v8  ;;  %v562_v16 = vmul.f32 %v2090_v39, %v1583_v33 }
  0x9b   :  { %1417 = shalt.err (!%p1414_p6)
}
  0x9c   :  { %s1418_s9 = scalar_lea.hbm %s2269_s3, 2048 }
  0x9d   :  { %p1419_p7 = scmp.ne.s32.totalorder %s2269_s3, %s1418_s9  ;;  %p1422_p8 = scmp.lt.u32.totalorder %s1418_s9, %s2269_s3 }
  0x9f   :  { %p1424_p9 = pnand %p1422_p8, %p1419_p7 }
  0xa1   :  { %1427 = shalt.err (!%p1424_p9)
}
  0xa2   :  { %s1466_s13 = smov 64   ;;  %s1467_s14 = smov 4   ;;  %v728_v21 = vadd.f32 %v712_v29, %v644_v23  ;;  %v563_v28 = vmul.f32 %v2090_v39, %v1585_v34  ;;  %v630_v33 = vmul.f32 %v2093_v24, %v1587_v35  ;;  %v631_v22 = vmul.f32 %v2093_v24, %v1597_v40  ;;  %v2430_v54 = vld [vmem:[#allocation19_spill] sm:$0xff]  ;;  %v2431_v0 = vld [vmem:[#allocation20_spill] sm:$0xff]  ;;  %v2432_v35 = vld [vmem:[#allocation21_spill] sm:$0xff] }
  0xa3   :  { %999 = dma.vmem_to_hbm [thread:$0]  %s2117_s5, 2048, %s2269_s3, [#allocation4], %s1466_s13, %s1466_s13, %s1467_s14   ;;  %v1288_v25 = vpack.c.bf16 %v811_v46, %v810_v12  ;;  %v729_v61 = vadd.f32 %v713_v58, %v645_v51  ;;  %v714_v53 = vmul.f32 %v2096_v11, %v1601_v45  ;;  %v715_v57 = vmul.f32 %v2096_v11, %v2430_v54  ;;  %v2433_v40 = vld [vmem:[#allocation22_spill] sm:$0xff]  ;;  %v2434_v3 = vld [vmem:[#allocation23_spill] sm:$0xff]  ;;  %v2435_v7 = vld [vmem:[#allocation24_spill] sm:$0xff] }
  0xa4   :  { %v812_v37 = vadd.f32 %v796_v13, %v728_v21  ;;  %v646_v43 = vadd.f32 %v630_v33, %v562_v16  ;;  %v647_v30 = vadd.f32 %v631_v22, %v563_v28  ;;  %v798_v34 = vmul.f32 %v2111_v41, %v2431_v0  ;;  %v2436_v56 = vld [vmem:[#allocation25_spill] sm:$0xff]  ;;  %v2437_v29 = vld [vmem:[#allocation26_spill] sm:$0xff]  ;;  %v2438_v2 = vld [vmem:[#allocation27_spill] sm:$0xff]  ;;  %s1468_s3 = smov [#allocation10]  }
  0xa5   :  { %1289 = vst [vmem:[#allocation10 + $0x40] sm:$0xff] %v1288_v25   ;;  %v813_v19 = vadd.f32 %v797_v15, %v729_v61  ;;  %v799_v49 = vmul.f32 %v2111_v41, %v2432_v35  ;;  %v564_v1 = vmul.f32 %v2090_v39, %v2433_v40  ;;  %v565_v45 = vmul.f32 %v2090_v39, %v2434_v3  ;;  %v2439_v50 = vld [vmem:[#allocation28_spill] sm:$0xff]  ;;  %v2440_v21 = vld [vmem:[#allocation29_spill] sm:$0xff]  ;;  %v2441_v33 = vld [vmem:[#allocation30_spill] sm:$0xff]  ;;  %s1005_s17 = sshll.u32 %s1468_s3, 4  ;;  %s1006_s17 = int_to_ptr.vmem [resolvable:$true] %s1005_s17 }
  0xa6   :  { %v730_v4 = vadd.f32 %v714_v53, %v646_v43  ;;  %v731_v5 = vadd.f32 %v715_v57, %v647_v30  ;;  %v632_v62 = vmul.f32 %v2093_v24, %v2435_v7  ;;  %v633_v8 = vmul.f32 %v2093_v24, %v2436_v56  ;;  %v2442_v25 = vld [vmem:[#allocation31_spill] sm:$0xff]  ;;  %s1428_s18 = scalar_lea.vmem %s1006_s17, 2048  ;;  %p1433_p11 = scmp.lt.s32.totalorder %s1006_s17, %s1006_s17 }
  0xa7   :  { %v1293_v9 = vpack.c.bf16 %v813_v19, %v812_v37  ;;  %v716_v23 = vmul.f32 %v2096_v11, %v2437_v29  ;;  %v717_v58 = vmul.f32 %v2096_v11, %v2438_v2  ;;  %v800_v13 = vmul.f32 %v2111_v41, %v2439_v50  ;;  %v2443_v0 = vld [vmem:[#allocation35_spill] sm:$0xff]  ;;  %v2446_v29 = vld [vmem:[#allocation45_spill] sm:$0xff]  ;;  %p1429_p10 = scmp.ne.s32.totalorder %s1006_s17, %s1428_s18  ;;  %p1434_p12 = scmp.lt.s32.totalorder %s1428_s18, %s1428_s18 }
  0xa8   :  { %v814_v15 = vadd.f32 %v798_v34, %v730_v4  ;;  %v815_v12 = vadd.f32 %v799_v49, %v731_v5  ;;  %v648_v46 = vadd.f32 %v632_v62, %v564_v1  ;;  %v649_v51 = vadd.f32 %v633_v8, %v565_v45  ;;  %v2444_v4 = vld [vmem:[#allocation40_spill] sm:$0xff] }
  0xa9   :  { %1346 = vst [vmem:[#allocation10 + $0x48] sm:$0xff] %v1293_v9   ;;  %v801_v16 = vmul.f32 %v2111_v41, %v1641_v32  ;;  %v566_v28 = vmul.f32 %v2090_v39, %v2440_v21  ;;  %v567_v22 = vmul.f32 %v2090_v39, %v2441_v33  ;;  %v634_v61 = vmul.f32 %v2093_v24, %v2442_v25  ;;  %p1435_p13 = por %p1434_p12, %p1433_p11 }
  0xaa   :  { %v1298_v53 = vpack.c.bf16 %v815_v12, %v814_v15  ;;  %v732_v54 = vadd.f32 %v716_v23, %v648_v46  ;;  %v733_v57 = vadd.f32 %v717_v58, %v649_v51  ;;  %v635_v37 = vmul.f32 %v2093_v24, %v2413_v31  ;;  %v2447_v58 = vld [vmem:[#allocation47_spill] sm:$0xff]  ;;  %v2448_v12 = vld [vmem:[#allocation49_spill] sm:$0xff] }
  0xab   :  { %v650_v43 = vadd.f32 %v634_v61, %v566_v28  ;;  %v718_v30 = vmul.f32 %v2096_v11, %v2414_v42  ;;  %v719_v32 = vmul.f32 %v2096_v11, %v2415_v27  ;;  %v802_v34 = vmul.f32 %v2111_v41, %v2443_v0  ;;  %p1436_p0 = pnand %p1435_p13, %p1429_p10 }
  0xac   :  { %1347 = vst [vmem:[#allocation10 + $0x50] sm:$0xff] %v1298_v53   ;;  %v816_v19 = vadd.f32 %v800_v13, %v732_v54  ;;  %v817_v35 = vadd.f32 %v801_v16, %v733_v57  ;;  %v651_v49 = vadd.f32 %v635_v37, %v567_v22  ;;  %v803_v40 = vmul.f32 %v2111_v41, %v2387_v17  ;;  %v2449_v22 = vld [vmem:[#allocation51_spill] sm:$0xff]  ;;  %v2450_v53 = vld [vmem:[#allocation52_spill] sm:$0xff] }
  0xad   :  { %v734_v1 = vadd.f32 %v718_v30, %v650_v43  ;;  %v568_v31 = vmul.f32 %v2090_v39, %v2388_v38  ;;  %v569_v42 = vmul.f32 %v2090_v39, %v2389_v36  ;;  %v636_v27 = vmul.f32 %v2093_v24, %v2417_v63  ;;  %v2445_v63 = vld [vmem:[#allocation44_spill] sm:$0xff]  ;;  %v2451_v43 = vld [vmem:[#allocation55_spill] sm:$0xff] }
  0xae   :  { %v1303_v3 = vpack.c.bf16 %v817_v35, %v816_v19  ;;  %v735_v45 = vadd.f32 %v719_v32, %v651_v49  ;;  %v637_v5 = vmul.f32 %v2093_v24, %v2444_v4  ;;  %v720_v7 = vmul.f32 %v2096_v11, %v2392_v10 }
  0xaf   :  { %v818_v62 = vadd.f32 %v802_v34, %v734_v1  ;;  %v652_v17 = vadd.f32 %v636_v27, %v568_v31  ;;  %v721_v56 = vmul.f32 %v2096_v11, %v2419_v60  ;;  %v804_v38 = vmul.f32 %v2111_v41, %v2420_v6 }
  0xb0   :  { %1348 = vst [vmem:[#allocation10 + $0x58] sm:$0xff] %v1303_v3   ;;  %v819_v36 = vadd.f32 %v803_v40, %v735_v45  ;;  %v653_v8 = vadd.f32 %v637_v5, %v569_v42  ;;  %v805_v9 = vmul.f32 %v2111_v41, %v2445_v63  ;;  %v570_v23 = vmul.f32 %v2090_v39, %v2446_v29 }
  0xb1   :  { %v736_v2 = vadd.f32 %v720_v7, %v652_v17  ;;  %v571_v10 = vmul.f32 %v2090_v39, %v2397_v48  ;;  %v638_v50 = vmul.f32 %v2093_v24, %v2447_v58  ;;  %v639_v60 = vmul.f32 %v2093_v24, %v2399_v47 }
  0xb2   :  { %v1308_v6 = vpack.c.bf16 %v819_v36, %v818_v62  ;;  %v737_v13 = vadd.f32 %v721_v56, %v653_v8  ;;  %v722_v15 = vmul.f32 %v2096_v11, %v1727_v52  ;;  %v723_v46 = vmul.f32 %v2096_v11, %v2448_v12 }
  0xb3   :  { %v820_v51 = vadd.f32 %v804_v38, %v736_v2  ;;  %v654_v16 = vadd.f32 %v638_v50, %v570_v23  ;;  %v655_v21 = vadd.f32 %v639_v60, %v571_v10  ;;  %v806_v48 = vmul.f32 %v2111_v41, %v1737_v59 }
  0xb4   :  { %1349 = vst [vmem:[#allocation10 + $0x60] sm:$0xff] %v1308_v6   ;;  %v821_v28 = vadd.f32 %v805_v9, %v737_v13  ;;  %v807_v33 = vmul.f32 %v2111_v41, %v1749_v14  ;;  %v572_v47 = vmul.f32 %v2090_v39, %v2424_v44  ;;  %v573_v52 = vmul.f32 %v2090_v39, %v2449_v22 }
  0xb5   :  { %v738_v25 = vadd.f32 %v722_v15, %v654_v16  ;;  %v739_v61 = vadd.f32 %v723_v46, %v655_v21  ;;  %v640_v54 = vmul.f32 %v2093_v24, %v2450_v53  ;;  %v641_v57 = vmul.f32 %v2093_v24, %v2401_v26 }
  0xb6   :  { %v1313_v59 = vpack.c.bf16 %v821_v28, %v820_v51  ;;  %v724_v37 = vmul.f32 %v2096_v11, %v2426_v20  ;;  %v725_v14 = vmul.f32 %v2096_v11, %v2451_v43  ;;  %v808_v44 = vmul.f32 %v2111_v41, %v1769_v18 }
  0xb7   :  { %v822_v30 = vadd.f32 %v806_v48, %v738_v25  ;;  %v823_v39 = vadd.f32 %v807_v33, %v739_v61  ;;  %v656_v32 = vadd.f32 %v640_v54, %v572_v47  ;;  %v657_v0 = vadd.f32 %v641_v57, %v573_v52 }
  0xb8   :  { %1350 = vst [vmem:[#allocation10 + $0x68] sm:$0xff] %v1313_v59   ;;  %v809_v34 = vmul.f32 %v2111_v41, %v1783_v55 }
  0xb9   :  { %v1318_v19 = vpack.c.bf16 %v823_v39, %v822_v30  ;;  %v740_v26 = vadd.f32 %v724_v37, %v656_v32  ;;  %v741_v24 = vadd.f32 %v725_v14, %v657_v0 }
  0xbb   :  { %1351 = vst [vmem:[#allocation10 + $0x70] sm:$0xff] %v1318_v19   ;;  %v824_v20 = vadd.f32 %v808_v44, %v740_v26  ;;  %v825_v35 = vadd.f32 %v809_v34, %v741_v24 }
  0xbd   :  { %v1323_v11 = vpack.c.bf16 %v825_v35, %v824_v20 }
  0xbf   :  { %1352 = vst [vmem:[#allocation10 + $0x78] sm:$0xff] %v1323_v11  }
  0xc0   :  { %1439 = shalt.err (!%p1436_p0)
}
  0xc1   :  { %s1440_s20 = scalar_lea.hbm %s2270_s4, 2048 }
  0xc2   :  { %p1441_p1 = scmp.ne.s32.totalorder %s2270_s4, %s1440_s20  ;;  %p1444_p2 = scmp.lt.u32.totalorder %s1440_s20, %s2270_s4 }
  0xc4   :  { %p1446_p3 = pnand %p1444_p2, %p1441_p1 }
  0xc6   :  { %1449 = shalt.err (!%p1446_p3)
}
  0xc7   :  { %1011 = dma.vmem_to_hbm [thread:$0]  %s1006_s17, 2048, %s2270_s4, [#allocation11], %s1466_s13, %s1466_s13, %s1467_s14  }
  0xc8   :  { %1456 = dma.done.wait [#allocation4], 2048  }
  0xc9   :  { %1457 = vsyncadd [#allocation4], 4294965248 }
  0xca   :  { %1458 = dma.done.wait [#allocation11], 2048  }
  0xcb   :  { %1459 = vsyncadd [#allocation11], 4294965248 }
  0xcc   :  { %1018 = vsyncpa [#allocation3], 1 }
  0xcd   :  { %1019 = vsyncpa [#allocation4], 1 }
  0xce   :  { %1020 = vsyncpa [#allocation11], 1 }
  0xcf   :  { %1021 = vsyncpa [#allocation5], 1 }
  0xd0   :  { %1022 = vsyncpa [#allocation6], 1 }

</bundles_post_ra>
